<compile_context>
chip_gen: v7x
topology: tpu7x:2x2x1
jax: 0.10.0
libtpu: 0.0.40
codegen_flags: <defaults>
</compile_context>

<pallas_src>
import functools

import jax
import jax.numpy as jnp
import numpy as np
from jax.experimental import pallas as pl
from jax.experimental.pallas import tpu as pltpu


# ----------------------------------------------------------------------------- in-kernel conv
def _banded_conv(x_ref, b_ref, *, n_blk, H, W, K, pad):
    """Replication-padded KxK conv of an (n_blk, H, W) block as one MXU contraction.

    x_ref : (n_blk, H, W) f32 VMEM  raw (unpadded) images
    b_ref : (K*W, W)      f32 VMEM  stacked banded weights (W replication pad folded in)
    returns (n_blk*H, W) f32 conv output (bias omitted: it cancels in the rescale).
    """
    x = x_ref[...]
    # H-direction replication pad in VMEM (no HBM pad copy in the wrapper).
    top = jnp.broadcast_to(x[:, 0:1, :], (n_blk, pad, W))
    bot = jnp.broadcast_to(x[:, H - 1:H, :], (n_blk, pad, W))
    xh = jnp.concatenate([top, x, bot], axis=1)                 # (n_blk, H + 2*pad, W)
    # Fuse the K row-shifted terms into a single (n_blk*H, K*W) @ (K*W, W) contraction:
    # contraction depth K*W instead of W, one MXU result drain instead of K.
    parts = [xh[:, kh:kh + H, :].reshape(n_blk * H, W) for kh in range(K)]
    xcat = jnp.concatenate(parts, axis=1)                       # (n_blk*H, K*W)
    # HIGHEST keeps f32 parity with the torch Conv2d; relax to default precision for
    # more MXU throughput if the tolerance allows.
    return jnp.dot(xcat, b_ref[...],
                   preferred_element_type=jnp.float32,
                   precision=jax.lax.Precision.HIGHEST)


# ----------------------------------------------------------------------------- kernels
def _stats_kernel(b_ref, x_ref, st_ref, *, n_blk, H, W, K, pad):
    """Per-block conv (kept in VMEM) -> (1, 2) = [min, max]."""
    acc = _banded_conv(x_ref, b_ref, n_blk=n_blk, H=H, W=W, K=K, pad=pad)
    st_ref[...] = jnp.concatenate(
        [jnp.min(acc, keepdims=True), jnp.max(acc, keepdims=True)], axis=1)


def _conv_rescale_kernel(so_ref, b_ref, x_ref, o_ref, *, n_blk, H, W, K, pad):
    """Recompute the conv and apply o = conv * scale + offset (scalars from SMEM)."""
    acc = _banded_conv(x_ref, b_ref, n_blk=n_blk, H=H, W=W, K=K, pad=pad)
    o_ref[...] = (acc * so_ref[0] + so_ref[1]).reshape(n_blk, H, W)


# ----------------------------------------------------------------------------- helpers
def _banded_weights(weights, W, pad):
    """Fold the (K, K) filter and the W-direction replication pad into one (K*W, W) matrix.

    B[kh*W + i, ow] = sum over kw with clamp(ow + kw - pad, 0, W-1) == i of weights[kh, kw]
    so that  out[oh, :] = xcat[oh, :] @ B  with  xcat[oh, kh*W + i] = xh[oh + kh, i].
    """
    K = 2 * pad + 1
    sel = np.zeros((K, W, W), np.float32)                       # static selection tensor
    for kw in range(K):
        for ow in range(W):
            i = min(max(ow + kw - pad, 0), W - 1)
            sel[kw, i, ow] = 1.0
    b = jnp.einsum("hk,kiw->hiw", weights.astype(jnp.float32), jnp.asarray(sel))
    return b.reshape(K * W, W)


def _pick_batch_block(N, H, W, K, budget_bytes=6 << 20):
    """Images per grid step: biggest divisor of N whose conv-body footprint fits ~6 MiB."""
    per_img = 4 * ((H + K) * W + K * H * W + 2 * H * W)         # xh + xcat + acc/out, f32
    nb = int(max(1, min(N, budget_bytes // max(per_img, 1))))
    while N % nb:
        nb -= 1
    return nb


# ----------------------------------------------------------------------------- forward
def cfar_forward(x, weights, bias, guard_band, reference_band):
    """x: (N, 1, H, W) float32 -> (N, 1, H, W) float32 (== CFARModule.forward)."""
    del bias  # Adding a constant shifts conv, min and max equally -> cancels in rescale.
    N, C, H, W = x.shape
    assert C == 1
    pad = guard_band + reference_band
    K = 2 * pad + 1

    x3 = x[:, 0].astype(jnp.float32)                            # (N, H, W); no HBM pad copy
    bstack = _banded_weights(weights, W, pad)                   # (K*W, W)

    n_blk = _pick_batch_block(N, H, W, K)
    grid = (N // n_blk,)

    # v5e default scoped VMEM is 16 MiB; raise only when the estimate needs it.
    est = 4 * (2 * K * W * W + n_blk * ((H + K) * W + K * H * W + 3 * H * W))
    cp_kwargs = dict(dimension_semantics=("parallel",))         # megacore on v7x
    if est > 12 << 20:
        cp_kwargs["vmem_limit_bytes"] = int(min(est * 2, 60 << 20))
    params = pltpu.CompilerParams(**cp_kwargs)

    b_spec = pl.BlockSpec((K * W, W), lambda i: (0, 0))         # grid-invariant weights
    x_spec = pl.BlockSpec((n_blk, H, W), lambda i: (i, 0, 0))   # many images per step

    # ---- Pass 1: banded MXU conv -> per-block (min, max); conv stays in VMEM ---------
    stats = pl.pallas_call(
        functools.partial(_stats_kernel, n_blk=n_blk, H=H, W=W, K=K, pad=pad),
        out_shape=jax.ShapeDtypeStruct((grid[0], 1, 2), jnp.float32),
        grid=grid,
        in_specs=[b_spec, x_spec],
        out_specs=pl.BlockSpec((None, 1, 2), lambda i: (i, 0, 0)),
        compiler_params=params,
    )(bstack, x3)

    # ---- Global min/max (matches torch x.min()/x.max()) + scalar scale/offset --------
    g_min = jnp.min(stats[:, 0, 0])
    g_max = jnp.max(stats[:, 0, 1])
    # NOTE: like the torch reference this divides by zero if the conv output is constant.
    scale = (195.0 - (-59.0)) / (g_max - g_min)                 # one scalar divide total
    offset = -59.0 - g_min * scale
    so = jnp.stack([scale, offset]).astype(jnp.float32)         # (2,) -> SMEM

    # ---- Pass 2: recompute conv + FMA rescale (no conv round-trip through HBM) -------
    out = pl.pallas_call(
        functools.partial(_conv_rescale_kernel, n_blk=n_blk, H=H, W=W, K=K, pad=pad),
        out_shape=jax.ShapeDtypeStruct((N, H, W), jnp.float32),
        grid=grid,
        in_specs=[pl.BlockSpec(memory_space=pltpu.MemorySpace.SMEM),  # [scale, offset]
                  b_spec, x_spec],
        out_specs=pl.BlockSpec((n_blk, H, W), lambda i: (i, 0, 0)),
        compiler_params=params,
    )(so, bstack, x3)

    return out[:, None, :, :]


# ----------------------------------------------------------------------------- init
def init_cfar_params(key, guard_band, reference_band, alpha):
    """Deterministic re-implementation of CFARModule.initialize_weights + Conv2d bias init."""
    K = 2 * (guard_band + reference_band) + 1
    k_outer, k_inner, k_bias = jax.random.split(key, 3)

    # Outer ring: U(-1.01, -0.99)
    w = jax.random.uniform(k_outer, (K, K), jnp.float32, minval=-1.01, maxval=-0.99)
    # Inner (guard + CUT) region: U(0, 0.001)
    inner = jax.random.uniform(
        k_inner,
        (K - 2 * reference_band, K - 2 * reference_band),
        jnp.float32, minval=0.0, maxval=0.001,
    )
    w = w.at[reference_band:K - reference_band,
             reference_band:K - reference_band].set(inner)
    # Center tap = |sum(weights)| / alpha
    w = w.at[K // 2, K // 2].set(jnp.abs(jnp.sum(w)) / alpha)

    # Conv2d default bias init (unused downstream: it cancels in the min/max rescale).
    bound = 1.0 / np.sqrt(K * K)
    bias = jax.random.uniform(k_bias, (1,), jnp.float32, minval=-bound, maxval=bound)
    return w, bias


# ----------------------------------------------------------------------------- main
if __name__ == "__main__":
    guard_band = 1
    reference_band = 2
    alpha = 10.0

    key = jax.random.PRNGKey(0)
    k_params, k_x = jax.random.split(key)
    weights, bias = init_cfar_params(k_params, guard_band, reference_band, alpha)

    # Small deterministic input, NCHW with in_channels=1 (as required by Conv2d(1,1,...)).
    N, H, W = 2, 16, 16
    x = jax.random.normal(k_x, (N, 1, H, W), jnp.float32)

    out = cfar_forward(x, weights, bias, guard_band, reference_band)
    out = jax.block_until_ready(out)

    assert out.shape == (N, 1, H, W)
    assert out.dtype == jnp.float32
    # Output must lie in [-59, 195] by construction of the min/max rescale.
    assert float(jnp.min(out)) >= -59.0 - 1e-3
    assert float(jnp.max(out)) <= 195.0 + 1e-3

    # Pure-JAX reference (direct tap sum; bias omitted since it cancels in the rescale).
    pad = guard_band + reference_band
    K = 2 * pad + 1
    xp_full = jnp.pad(x[:, 0], ((0, 0), (pad, pad), (pad, pad)), mode="edge")
    ref = jnp.zeros((N, H, W), jnp.float32)
    for kh in range(K):
        for kw in range(K):
            ref = ref + weights[kh, kw] * xp_full[:, kh:kh + H, kw:kw + W]
    r_min, r_max = jnp.min(ref), jnp.max(ref)
    ref = (195.0 - (-59.0)) * (ref - r_min) / (r_max - r_min) + (-59.0)
    np.testing.assert_allclose(np.asarray(out[:, 0]), np.asarray(ref), atol=1e-2)

    print("KERNEL_OK")
</pallas_src>

<mosaic_0001>
module attributes {stable_mosaic.version = 11 : i64} {
  func.func @_stats_kernel(%arg0: i32, %arg1: memref<112x16xf32, #tpu.memory_space<vmem>>, %arg2: memref<2x16x16xf32, #tpu.memory_space<vmem>>, %arg3: memref<1x1x2xf32, #tpu.memory_space<vmem>>) attributes {dimension_semantics = [#tpu.dimension_semantics<parallel>], iteration_bounds = array<i64: 1>, scalar_prefetch = 0 : i64, scratch_operands = 0 : i64, tpu.core_type = #tpu.core_type<tc>, window_params = [{pipeline_mode = #tpu.pipeline_mode<synchronous>, transform_indices = @transform_0, window_bounds = array<i64: 112, 16>}, {transform_indices = @transform_1, window_bounds = array<i64: 2, 16, 16>}, {transform_indices = @transform_2, window_bounds = array<i64: 1, 1, 2>}]} {
    %c0 = arith.constant 0 : index
    %c0_0 = arith.constant 0 : index
    %c0_1 = arith.constant 0 : index
    %0 = vector.load %arg2[%c0, %c0_0, %c0_1] : memref<2x16x16xf32, #tpu.memory_space<vmem>>, vector<2x16x16xf32>
    %1 = vector.extract_strided_slice %0 {offsets = [0, 0, 0], sizes = [2, 1, 16], strides = [1, 1, 1]} : vector<2x16x16xf32> to vector<2x1x16xf32>
    %2 = vector.shape_cast %1 : vector<2x1x16xf32> to vector<2x1x16xf32>
    %3 = vector.broadcast %2 : vector<2x1x16xf32> to vector<2x3x16xf32>
    %4 = vector.extract_strided_slice %0 {offsets = [0, 15, 0], sizes = [2, 1, 16], strides = [1, 1, 1]} : vector<2x16x16xf32> to vector<2x1x16xf32>
    %5 = vector.shape_cast %4 : vector<2x1x16xf32> to vector<2x1x16xf32>
    %6 = vector.broadcast %5 : vector<2x1x16xf32> to vector<2x3x16xf32>
    %7 = tpu.concatenate %3, %0, %6 in 1 : vector<2x3x16xf32>, vector<2x16x16xf32>, vector<2x3x16xf32> -> vector<2x22x16xf32>
    %8 = vector.extract_strided_slice %7 {offsets = [0, 0, 0], sizes = [2, 16, 16], strides = [1, 1, 1]} : vector<2x22x16xf32> to vector<2x16x16xf32>
    %9 = vector.shape_cast %8 : vector<2x16x16xf32> to vector<32x16xf32>
    %10 = vector.extract_strided_slice %7 {offsets = [0, 1, 0], sizes = [2, 16, 16], strides = [1, 1, 1]} : vector<2x22x16xf32> to vector<2x16x16xf32>
    %11 = vector.shape_cast %10 : vector<2x16x16xf32> to vector<32x16xf32>
    %12 = vector.extract_strided_slice %7 {offsets = [0, 2, 0], sizes = [2, 16, 16], strides = [1, 1, 1]} : vector<2x22x16xf32> to vector<2x16x16xf32>
    %13 = vector.shape_cast %12 : vector<2x16x16xf32> to vector<32x16xf32>
    %14 = vector.extract_strided_slice %7 {offsets = [0, 3, 0], sizes = [2, 16, 16], strides = [1, 1, 1]} : vector<2x22x16xf32> to vector<2x16x16xf32>
    %15 = vector.shape_cast %14 : vector<2x16x16xf32> to vector<32x16xf32>
    %16 = vector.extract_strided_slice %7 {offsets = [0, 4, 0], sizes = [2, 16, 16], strides = [1, 1, 1]} : vector<2x22x16xf32> to vector<2x16x16xf32>
    %17 = vector.shape_cast %16 : vector<2x16x16xf32> to vector<32x16xf32>
    %18 = vector.extract_strided_slice %7 {offsets = [0, 5, 0], sizes = [2, 16, 16], strides = [1, 1, 1]} : vector<2x22x16xf32> to vector<2x16x16xf32>
    %19 = vector.shape_cast %18 : vector<2x16x16xf32> to vector<32x16xf32>
    %20 = vector.extract_strided_slice %7 {offsets = [0, 6, 0], sizes = [2, 16, 16], strides = [1, 1, 1]} : vector<2x22x16xf32> to vector<2x16x16xf32>
    %21 = vector.shape_cast %20 : vector<2x16x16xf32> to vector<32x16xf32>
    %22 = tpu.concatenate %9, %11, %13, %15, %17, %19, %21 in 1 : vector<32x16xf32>, vector<32x16xf32>, vector<32x16xf32>, vector<32x16xf32>, vector<32x16xf32>, vector<32x16xf32>, vector<32x16xf32> -> vector<32x112xf32>
    %c0_2 = arith.constant 0 : index
    %c0_3 = arith.constant 0 : index
    %23 = vector.load %arg1[%c0_2, %c0_3] : memref<112x16xf32, #tpu.memory_space<vmem>>, vector<112x16xf32>
    %cst = arith.constant dense<0.000000e+00> : vector<32x16xf32>
    %24 = tpu.matmul %22, %23, %cst {dimension_numbers = #tpu.dot_dimension_numbers<[1], [0], [0], [1], [0, 0, 1, 1], [], []>, precision = #tpu.contract_precision<fp32>} : vector<32x112xf32>, vector<112x16xf32>, vector<32x16xf32> -> vector<32x16xf32>
    %25 = vector.shape_cast %24 : vector<32x16xf32> to vector<1x32x16xf32>
    %cst_4 = arith.constant dense<0x7F800000> : vector<1xf32>
    %26 = vector.multi_reduction <minimumf>, %25, %cst_4 [1, 2] : vector<1x32x16xf32> to vector<1xf32>
    %27 = vector.shape_cast %26 : vector<1xf32> to vector<1x1x1xf32>
    %28 = vector.extract %27[0, 0, 0] : f32 from vector<1x1x1xf32>
    %29 = vector.broadcast %28 : f32 to vector<1x1xf32>
    %30 = vector.shape_cast %24 : vector<32x16xf32> to vector<1x32x16xf32>
    %cst_5 = arith.constant dense<0xFF800000> : vector<1xf32>
    %31 = vector.multi_reduction <maximumf>, %30, %cst_5 [1, 2] : vector<1x32x16xf32> to vector<1xf32>
    %32 = vector.shape_cast %31 : vector<1xf32> to vector<1x1x1xf32>
    %33 = vector.extract %32[0, 0, 0] : f32 from vector<1x1x1xf32>
    %34 = vector.broadcast %33 : f32 to vector<1x1xf32>
    %35 = tpu.concatenate %29, %34 in 1 : vector<1x1xf32>, vector<1x1xf32> -> vector<1x2xf32>
    %c0_6 = arith.constant 0 : index
    %c0_7 = arith.constant 0 : index
    %c0_8 = arith.constant 0 : index
    %36 = vector.load %arg3[%c0_6, %c0_7, %c0_8] : memref<1x1x2xf32, #tpu.memory_space<vmem>>, vector<1x1x2xf32>
    %37 = vector.shape_cast %36 : vector<1x1x2xf32> to vector<1x2xf32>
    %38 = vector.shape_cast %35 : vector<1x2xf32> to vector<1x1x2xf32>
    tpu.vector_store %arg3[%c0_6, %c0_7, %c0_8], %38 {strides = array<i32>} : memref<1x1x2xf32, #tpu.memory_space<vmem>>, vector<1x1x2xf32>,
    return
  }
  func.func @transform_0(%arg0: i32) -> (i32, i32) {
    %c0_i32 = arith.constant 0 : i32
    %c0_i32_0 = arith.constant 0 : i32
    %c0_i32_1 = arith.constant 0 : i32
    return %c0_i32, %c0_i32_0 : i32, i32
  }
  func.func @transform_1(%arg0: i32) -> (i32, i32, i32) {
    %c0_i32 = arith.constant 0 : i32
    %c0_i32_0 = arith.constant 0 : i32
    %c0_i32_1 = arith.constant 0 : i32
    return %arg0, %c0_i32, %c0_i32_0 : i32, i32, i32
  }
  func.func @transform_2(%arg0: i32) -> (i32, i32, i32) {
    %c0_i32 = arith.constant 0 : i32
    %c0_i32_0 = arith.constant 0 : i32
    %c0_i32_1 = arith.constant 0 : i32
    return %arg0, %c0_i32, %c0_i32_0 : i32, i32, i32
  }
}

</mosaic_0001>

<bundles_post_ra>
// kernel: tpu_custom_call.1
= control target key start
LH: loop header
LB: loop body
LE: loop exit
PB: predicated region body
PF: predicated region fallthrough
CT: control target
= control target key end

     0   :  { %v16_v2 = vlaneseq  ;;  %vm36_vm0 = vcmask 1042432   ;;  %s2102_s0 = inlined_call_operand.vmem [shape: f32[112,16], index: 0, kind: input, shape index: {}]   ;;  %s2103_s1 = inlined_call_operand.vmem [shape: f32[2,16,16], index: 1, kind: input, shape index: {}]   ;;  %s2104_s2 = inlined_call_operand.hbm [shape: f32[1,1,2], index: 2, kind: output, shape index: {}]  }
   0x1   :  { %v12_v0 = vld [vmem:[%s2103_s1] sm:$0xff]  ;;  %v13_v1 = vld [vmem:[%s2103_s1 + $0x8] sm:$0xff] }
   0x2   :  { %v37_v3 = vrot.slane %v12_v0, 5  ;;  %v38_v4 = vrot.slane %v13_v1, 5  ;;  %v17_v5 = vshrl.u32 %v16_v2, 7 }
   0x4   :  { %v18_v6 = vsub.s32 0, %v17_v5  ;;  %v1611_v7 = vsel %vm36_vm0, %v37_v3, %v38_v4  ;;  %v26_v8 = vsub.s32 7, %v17_v5 }
   0x6   :  { %v19_v9 = vrot.slane %v12_v0, %v18_v6  ;;  %v27_v10 = vrot.slane %v13_v1, %v26_v8 }
   0x7   :  { %7 = vsyncpa [#allocation3], 0  ;;  %v70_v11 = vrot.slane %v1611_v7, 2  ;;  %v59_v12 = vrot.slane %v1611_v7, 1  ;;  %vm68_vm1 = vcmask 1045504   ;;  %vm57_vm2 = vcmask 1046528  }
   0x8   :  { %v1616_v13 = vsel %vm36_vm0, %v19_v9, %v37_v3  ;;  %v1619_v14 = vsel %vm36_vm0, %v38_v4, %v27_v10  ;;  %v14_v15 = vld [vmem:[%s2103_s1 + $0x10] sm:$0xff]  ;;  %v15_v16 = vld [vmem:[%s2103_s1 + $0x18] sm:$0xff]  ;;  %s1582_s17 = smov 32   ;;  %s1583_s18 = smov 16   ;;  %v81_v25 = vrot.slane %v1611_v7, 3  ;;  %vm79_vm3 = vcmask 1044480  }
   0x9   :  { %v69_v17 = vrot.slane %v1616_v13, 2  ;;  %v58_v18 = vrot.slane %v1616_v13, 1  ;;  %v72_v19 = vrot.slane %v1619_v14, 2  ;;  %v61_v20 = vrot.slane %v1619_v14, 1  ;;  %v224_v42 = vld [vmem:[%s2102_s0] sm:$0xff]  ;;  %v225_v43 = vld [vmem:[%s2102_s0 + $0x8] sm:$0xff] }
   0xa   :  { %v40_v23 = vrot.slane %v14_v15, 5  ;;  %v41_v24 = vrot.slane %v15_v16, 5  ;;  %v83_v28 = vrot.slane %v1619_v14, 3  ;;  %v80_v29 = vrot.slane %v1616_v13, 3  ;;  %v226_v44 = vld [vmem:[%s2102_s0 + $0x10] sm:$0xff]  ;;  %v227_v49 = vld [vmem:[%s2102_s0 + $0x18] sm:$0xff] }
   0xb   :  { %v71_v21 = vsel %vm68_vm1, %v69_v17, %v70_v11  ;;  %v60_v22 = vsel %vm57_vm2, %v58_v18, %v59_v12  ;;  %v73_v26 = vsel %vm68_vm1, %v70_v11, %v72_v19  ;;  %v62_v27 = vsel %vm57_vm2, %v59_v12, %v61_v20  ;;  %s1584_s26 = smov 48   ;;  %v228_v54 = vld [vmem:[%s2102_s0 + $0x20] sm:$0xff]  ;;  %v1686_v55 = vld [vmem:[%s2102_s0 + $0x28] sm:$0xff]  ;;  %s1585_s3 = smov 64   ;;  %v1706_v9 = vld [vmem:[%s2102_s0 + $0x30] sm:$0xff] }
   0xc   :  { %134 = vrot.lane.b32.xlu1 %v71_v21, %s1582_s17  ;;  %122 = vrot.lane.b32.xlu0 %v60_v22, %s1583_s18  ;;  %v31_v30 = vrot.slane %v15_v16, %v26_v8  ;;  %v92_v31 = vrot.slane %v1611_v7, 4  ;;  %v94_v32 = vrot.slane %v1619_v14, 4  ;;  %v1643_v33 = vsel %vm36_vm0, %v40_v23, %v41_v24  ;;  %v1711_v10 = vld [vmem:[%s2102_s0 + $0x38] sm:$0xff]  ;;  %s1586_s12 = smov 80   ;;  %s1587_s1 = smov 96  }
   0xd   :  { %v23_v34 = vrot.slane %v14_v15, %v18_v6  ;;  %vm90_vm4 = vcmask 1043456   ;;  %v91_v35 = vrot.slane %v1616_v13, 4  ;;  %v84_v36 = vsel %vm79_vm3, %v81_v25, %v83_v28 }
   0xe   :  { %v82_v37 = vsel %vm79_vm3, %v80_v29, %v81_v25  ;;  %vm111_vm5 = vcmask 1041408   ;;  %v102_v38 = vrot.slane %v1611_v7, 5  ;;  %v113_v39 = vrot.slane %v1611_v7, 6  ;;  %v1746_v25 = vld [vmem:[%s2102_s0 + $0x48] sm:$0xff] }
   0xf   :  { %v1653_v40 = vsel %vm36_vm0, %v41_v24, %v31_v30  ;;  %v64_v41 = vrot.slane %v1643_v33, 1  ;;  %v95_v45 = vsel %vm90_vm4, %v92_v31, %v94_v32  ;;  %v104_v46 = vrot.slane %v1619_v14, 5  ;;  %v1741_v24 = vld [vmem:[%s2102_s0 + $0x40] sm:$0xff] }
  0x10   :  { %136 = vrot.lane.b32.xlu1 %v73_v26, %s1582_s17  ;;  %124 = vrot.lane.b32.xlu0 %v62_v27, %s1583_s18  ;;  %v1668_v47 = vsel %vm36_vm0, %v23_v34, %v40_v23  ;;  %v75_v48 = vrot.slane %v1643_v33, 2  ;;  %v93_v50 = vsel %vm90_vm4, %v91_v35, %v92_v31  ;;  %v101_v51 = vrot.slane %v1616_v13, 5  ;;  %v1765_v34 = vld [vmem:[%s2102_s0 + $0x50] sm:$0xff] }
  0x11   :  { %v115_v52 = vrot.slane %v1619_v14, 6  ;;  %v112_v53 = vrot.slane %v1616_v13, 6  ;;  %v66_v56 = vrot.slane %v1653_v40, 1  ;;  %v252_v57 = vand.u32 4294901760, %v224_v42 }
  0x12   :  { %v255_v58 = vand.u32 4294901760, %v225_v43  ;;  %v258_v59 = vand.u32 4294901760, %v226_v44  ;;  %v63_v60 = vrot.slane %v1668_v47, 1  ;;  %v77_v61 = vrot.slane %v1653_v40, 2 }
  0x13   :  { %v86_v62 = vrot.slane %v1643_v33, 3  ;;  %v261_v63 = vand.u32 4294901760, %v227_v49  ;;  %v74_v0 = vrot.slane %v1668_v47, 2  ;;  %v264_v2 = vand.u32 4294901760, %v228_v54 }
  0x14   :  { %148 = vrot.lane.b32.xlu1 %v84_v36, %s1584_s26  ;;  %146 = vrot.lane.b32.xlu0 %v82_v37, %s1584_s26  ;;  %v1693_v1 = vpack.c.bf16 %v255_v58, %v252_v57  ;;  %v267_v3 = vand.u32 4294901760, %v1686_v55  ;;  %v105_v4 = vsel %vm36_vm0, %v102_v38, %v104_v46  ;;  %v103_v5 = vsel %vm36_vm0, %v101_v51, %v102_v38 }
  0x15   :  { %v97_v6 = vrot.slane %v1643_v33, 4  ;;  %v1701_v8 = vpack.c.bf16 %v261_v63, %v258_v59  ;;  %v116_v11 = vsel %vm111_vm5, %v113_v39, %v115_v52  ;;  %v114_v12 = vsel %vm111_vm5, %v112_v53, %v113_v39 }
  0x16   :  { %v1716_v14 = vsel %vm57_vm2, %v64_v41, %v66_v56  ;;  %v88_v15 = vrot.slane %v1653_v40, 3  ;;  %1444 = vmatprep.subr.bf16.mxu0 %v1693_v1  ;;  %1360 = vmatprep.subr.bf16.mxu1 %v1693_v1  ;;  %v65_v16 = vsel %vm57_vm2, %v63_v60, %v64_v41  ;;  %v1723_v17 = vsel %vm68_vm1, %v75_v48, %v77_v61 }
  0x17   :  { %v85_v18 = vrot.slane %v1668_v47, 3  ;;  %v99_v19 = vrot.slane %v1653_v40, 4  ;;  %1446 = vmatpush3.bf16.msra.mxu0 %v1693_v1  ;;  %1362 = vmatpush3.bf16.msra.mxu1 %v1693_v1  ;;  %v1730_v20 = vsel %vm68_vm1, %v74_v0, %v75_v48  ;;  %v1734_v21 = vpack.c.bf16 %v267_v3, %v264_v2  ;;  %v236_v0 = vld [vmem:[%s2102_s0 + $0x60] sm:$0xff] }
  0x18   :  { %160 = vrot.lane.b32.xlu1 %v95_v45, %s1585_s3  ;;  %158 = vrot.lane.b32.xlu0 %v93_v50, %s1585_s3  ;;  %v270_v22 = vand.u32 4294901760, %v1706_v9  ;;  %v273_v23 = vand.u32 4294901760, %v1711_v10  ;;  %v96_v26 = vrot.slane %v1668_v47, 4  ;;  %v1751_v27 = vsub.f32 %v224_v42, %v252_v57 }
  0x19   :  { %1448 = vmatprep.subr.bf16.mxu0 %v1701_v8  ;;  %1364 = vmatprep.subr.bf16.mxu1 %v1701_v8  ;;  %v1753_v28 = vsub.f32 %v225_v43, %v255_v58  ;;  %v1755_v29 = vsub.f32 %v226_v44, %v258_v59  ;;  %v1758_v30 = vsel %vm79_vm3, %v86_v62, %v88_v15  ;;  %v107_v31 = vrot.slane %v1643_v33, 5  ;;  %v1786_v43 = vld [vmem:[%s2102_s0 + $0x58] sm:$0xff] }
  0x1a   :  { %v109_v32 = vrot.slane %v1653_v40, 5  ;;  %v1767_v35 = vsub.f32 %v227_v49, %v261_v63  ;;  %v276_v36 = vand.u32 4294901760, %v1741_v24  ;;  %v279_v37 = vand.u32 4294901760, %v1746_v25 }
  0x1b   :  { %1450 = vmatpush3.bf16.msra.mxu0 %v1701_v8  ;;  %1366 = vmatpush3.bf16.msra.mxu1 %v1701_v8  ;;  %v387_v38 = vand.u32 4294901760, %v1755_v29  ;;  %v1774_v39 = vsub.f32 %v228_v54, %v264_v2  ;;  %v1777_v41 = vsel %vm79_vm3, %v85_v18, %v86_v62  ;;  %v1781_v42 = vpack.c.bf16 %v273_v23, %v270_v22  ;;  %v237_v2 = vld [vmem:[%s2102_s0 + $0x68] sm:$0xff]  ;;  %s1588_s0 = smov [#allocation2]  }
  0x1c   :  { %172 = vrot.lane.b32.xlu1 %v105_v4, %s1586_s12  ;;  %170 = vrot.lane.b32.xlu0 %v103_v5, %s1586_s12  ;;  %v394_v44 = vand.u32 4294901760, %v1767_v35  ;;  %v1790_v45 = vsub.f32 %v1686_v55, %v267_v3  ;;  %v282_v46 = vand.u32 4294901760, %v1765_v34  ;;  %v373_v48 = vand.u32 4294901760, %v1751_v27 }
  0x1d   :  { %1452 = vmatprep.subr.bf16.mxu0 %v1734_v21  ;;  %1368 = vmatprep.subr.bf16.mxu1 %v1734_v21  ;;  %v380_v49 = vand.u32 4294901760, %v1753_v28  ;;  %v401_v50 = vand.u32 4294901760, %v1774_v39  ;;  %v388_v52 = vsub.f32 %v1755_v29, %v387_v38  ;;  %v1805_v55 = vpack.c.bf16 %v279_v37, %v276_v36 }
  0x1e   :  { %v1798_v51 = vpack.c.bf16 %v394_v44, %v387_v38  ;;  %v395_v53 = vsub.f32 %v1767_v35, %v394_v44  ;;  %v408_v54 = vand.u32 4294901760, %v1790_v45  ;;  %v285_v56 = vand.u32 4294901760, %v1786_v43 }
  0x1f   :  { %1454 = vmatpush3.bf16.msra.mxu0 %v1734_v21  ;;  %1370 = vmatpush3.bf16.msra.mxu1 %v1734_v21  ;;  %v402_v57 = vsub.f32 %v1774_v39, %v401_v50  ;;  %v1810_v58 = vsub.f32 %v1706_v9, %v270_v22  ;;  %v389_v59 = vand.u32 4294901760, %v388_v52  ;;  %v1823_v63 = vsel %vm90_vm4, %v97_v6, %v99_v19 }
  0x20   :  { %184 = vrot.lane.b32.xlu1 %v116_v11, %s1587_s1  ;;  %182 = vrot.lane.b32.xlu0 %v114_v12, %s1587_s1  ;;  %v396_v60 = vand.u32 4294901760, %v395_v53  ;;  %v1814_v61 = vpack.c.bf16 %v408_v54, %v401_v50  ;;  %v409_v62 = vsub.f32 %v1790_v45, %v408_v54  ;;  %v1833_v5 = vsub.f32 %v1711_v10, %v273_v23 }
  0x21   :  { %1456 = vmatprep.subr.bf16.mxu0 %v1781_v42  ;;  %1372 = vmatprep.subr.bf16.mxu1 %v1781_v42  ;;  %v403_v3 = vand.u32 4294901760, %v402_v57  ;;  %v415_v4 = vand.u32 4294901760, %v1810_v58  ;;  %v374_v9 = vsub.f32 %v1751_v27, %v373_v48  ;;  %v381_v11 = vsub.f32 %v1753_v28, %v380_v49 }
  0x22   :  { %v1841_v12 = vpack.c.bf16 %v396_v60, %v389_v59  ;;  %v422_v15 = vand.u32 4294901760, %v1833_v5  ;;  %v1851_v18 = vsub.f32 %v1746_v25, %v279_v37  ;;  %v1855_v19 = vpack.c.bf16 %v285_v56, %v282_v46 }
  0x23   :  { %1458 = vmatpush3.bf16.msra.mxu0 %v1781_v42  ;;  %1374 = vmatpush3.bf16.msra.mxu1 %v1781_v42  ;;  %v416_v10 = vsub.f32 %v1810_v58, %v415_v4  ;;  %v288_v22 = vand.u32 4294901760, %v236_v0  ;;  %v291_v23 = vand.u32 4294901760, %v237_v2  ;;  %v98_v44 = vsel %vm90_vm4, %v96_v26, %v97_v6 }
  0x24   :  { %128 = vrot.lane.b32.xlu1 %v1716_v14, %s1583_s18  ;;  %126 = vrot.lane.b32.xlu0 %v65_v16, %s1583_s18  ;;  %v410_v14 = vand.u32 4294901760, %v409_v62  ;;  %v1848_v16 = vsub.f32 %v1741_v24, %v276_v36  ;;  %v1863_v24 = vpack.c.bf16 %v422_v15, %v415_v4  ;;  %v423_v36 = vsub.f32 %v1833_v5, %v422_v15 }
  0x25   :  { %1460 = vmatprep.subr.bf16.mxu0 %v1805_v55  ;;  %1376 = vmatprep.subr.bf16.mxu1 %v1805_v55  ;;  %v417_v25 = vand.u32 4294901760, %v416_v10  ;;  %v375_v50 = vand.u32 4294901760, %v374_v9  ;;  %v382_v52 = vand.u32 4294901760, %v381_v11  ;;  %v442_v54 = vsub.f32 %v1765_v34, %v282_v46 }
  0x26   :  { %v1857_v38 = vpack.c.bf16 %v410_v14, %v403_v3  ;;  %v429_v37 = vand.u32 4294901760, %v1848_v16  ;;  %v449_v57 = vsub.f32 %v1786_v43, %v285_v56  ;;  %v106_v59 = vrot.slane %v1668_v47, 5 }
  0x27   :  { %1462 = vmatpush3.bf16.msra.mxu0 %v1805_v55  ;;  %1378 = vmatpush3.bf16.msra.mxu1 %v1805_v55  ;;  %v1881_v6 = vpack.c.bf16 %v291_v23, %v288_v22  ;;  %v443_v46 = vand.u32 4294901760, %v442_v54  ;;  %v110_v62 = vsel %vm36_vm0, %v107_v31, %v109_v32  ;;  %v1901_v3 = vpack.c.bf16 %v380_v49, %v373_v48 }
  0x28   :  { %140 = vrot.lane.b32.xlu1 %v1723_v17, %s1582_s17  ;;  %138 = vrot.lane.b32.xlu0 %v1730_v20, %s1582_s17  ;;  %v436_v17 = vand.u32 4294901760, %v1851_v18  ;;  %v424_v20 = vand.u32 4294901760, %v423_v36  ;;  %v430_v53 = vsub.f32 %v1848_v16, %v429_v37  ;;  %v450_v56 = vand.u32 4294901760, %v449_v57  ;;  %s1039_s17 = sshll.u32 %s1588_s0, 4  ;;  %s1040_s17 = int_to_ptr.vmem [resolvable:$true] %s1039_s17 }
  0x29   :  { %1464 = vmatprep.subr.bf16.mxu0 %v1855_v19  ;;  %1380 = vmatprep.subr.bf16.mxu1 %v1855_v19  ;;  %v444_v9 = vsub.f32 %v442_v54, %v443_v46  ;;  %v456_v14 = vsub.f32 %v236_v0, %v288_v22  ;;  %v463_v48 = vsub.f32 %v237_v2, %v291_v23  ;;  %v118_v49 = vrot.slane %v1643_v33, 6  ;;  %s1558_s24 = scalar_lea.vmem %s1040_s17, 16  ;;  %s1562_s25 = scalar_lea.vmem %s1040_s17, 32 }
  0x2a   :  { %v1883_v26 = vpack.c.bf16 %v436_v17, %v429_v37  ;;  %v437_v60 = vsub.f32 %v1851_v18, %v436_v17  ;;  %v1890_v34 = vpack.c.bf16 %v424_v20, %v417_v25  ;;  %v431_v43 = vand.u32 4294901760, %v430_v53  ;;  %p1559_p0 = scmp.ne.s32.totalorder %s1040_s17, %s1558_s24  ;;  %p1563_p1 = scmp.lt.s32.totalorder %s1040_s17, %s1040_s17 }
  0x2b   :  { %1466 = vmatpush3.bf16.msra.mxu0 %v1855_v19  ;;  %1382 = vmatpush3.bf16.msra.mxu1 %v1855_v19  ;;  %v1907_v4 = vpack.c.bf16 %v450_v56, %v443_v46  ;;  %v451_v11 = vsub.f32 %v449_v57, %v450_v56  ;;  %v120_v15 = vrot.slane %v1653_v40, 6  ;;  %v445_v10 = vand.u32 4294901760, %v444_v9  ;;  %p1564_p2 = scmp.lt.s32.totalorder %s1562_s25, %s1558_s24 }
  0x2c   :  { %152 = vrot.lane.b32.xlu1 %v1758_v30, %s1584_s26  ;;  %150 = vrot.lane.b32.xlu0 %v1777_v41, %s1584_s26  ;;  %v1903_v30 = vpack.c.bf16 %v382_v52, %v375_v50  ;;  %v438_v41 = vand.u32 4294901760, %v437_v60  ;;  %v108_v36 = vsel %vm36_vm0, %v106_v59, %v107_v31  ;;  %v117_v37 = vrot.slane %v1668_v47, 6 }
  0x2d   :  { %1468 = vmatprep.subr.bf16.mxu0 %v1881_v6  ;;  %1384 = vmatprep.subr.bf16.mxu1 %v1881_v6  ;;  %v452_v25 = vand.u32 4294901760, %v451_v11  ;;  %v457_v50 = vand.u32 4294901760, %v456_v14  ;;  %v464_v0 = vand.u32 4294901760, %v463_v48  ;;  %v121_v31 = vsel %vm111_vm5, %v118_v49, %v120_v15  ;;  %p1565_p3 = por %p1564_p2, %p1563_p1 }
  0x2e   :  { %v1911_v32 = vpack.c.bf16 %v438_v41, %v431_v43  ;;  %v119_v23 = vsel %vm111_vm5, %v117_v37, %v118_v49  ;;  %v1940_v20 = vpack.c.bf16 %v1753_v28, %v1751_v27  ;;  %v1944_v53 = vpack.c.bf16 %v1767_v35, %v1755_v29 }
  0x2f   :  { %1470 = vmatpush3.bf16.msra.mxu0 %v1881_v6  ;;  %1386 = vmatpush3.bf16.msra.mxu1 %v1881_v6  ;;  %v1928_v40 = vpack.c.bf16 %v464_v0, %v457_v50  ;;  %v458_v2 = vsub.f32 %v456_v14, %v457_v50  ;;  %v465_v22 = vsub.f32 %v463_v48, %v464_v0  ;;  %vm194_vm6 = vcmask 130048   ;;  %p1566_p4 = pnand %p1565_p3, %p1559_p0 }
  0x30   :  { %164 = vrot.lane.b32.xlu1 %v1823_v63, %s1585_s3  ;;  %162 = vrot.lane.b32.xlu0 %v98_v44, %s1585_s3  ;;  %v1924_v63 = vpack.c.bf16 %v452_v25, %v445_v10  ;;  %v1948_v59 = vpack.c.bf16 %v1790_v45, %v1774_v39  ;;  %v1952_v60 = vpack.c.bf16 %v1833_v5, %v1810_v58  ;;  %vm199_vm7 = vcmask 261120  }
  0x31   :  { %1472 = vmatprep.subr.bf16.mxu0 %v1901_v3  ;;  %1388 = vmatprep.subr.bf16.mxu1 %v1903_v30  ;;  %v459_v44 = vand.u32 4294901760, %v458_v2  ;;  %v466_v52 = vand.u32 4294901760, %v465_v22  ;;  %v1956_v43 = vpack.c.bf16 %v1851_v18, %v1848_v16  ;;  %v1958_v46 = vpack.c.bf16 %v449_v57, %v442_v54 }
  0x32   :  { %v1960_v27 = vpack.c.bf16 %v463_v48, %v456_v14  ;;  %vm204_vm8 = vcmask 392192   ;;  %vm209_vm9 = vcmask 523264   ;;  %vm214_vm10 = vcmask 654336  }
  0x33   :  { %v1934_v17 = vpack.c.bf16 %v466_v52, %v459_v44  ;;  %vm219_vm11 = vcmask 785408   ;;  %vm238_vm12 = vcmask 916480   ;;  %vm1029_vm13 = vcmask 7168  }
  0x34   :  { %176 = vrot.lane.b32.xlu1 %v110_v62, %s1586_s12  ;;  %174 = vrot.lane.b32.xlu0 %v108_v36, %s1586_s12  ;;  %vm1031_vm14 = vcmask 8192  }
  0x38   :  { %188 = vrot.lane.b32.xlu1 %v121_v31, %s1587_s1  ;;  %186 = vrot.lane.b32.xlu0 %v119_v23, %s1587_s1 }
  0x7e   :  { %v135_v28 = vpop.permute.xlu1 %134  ;;  %v123_v56 = vpop.permute.xlu0 %122 }
  0x7f   :  { %v195_v58 = vsel %vm194_vm6, %v1616_v13, %v123_v56 }
  0x80   :  { %v200_v57 = vsel %vm199_vm7, %v195_v58, %v135_v28 }
  0x82   :  { %v137_v29 = vpop.permute.xlu1 %136  ;;  %v125_v35 = vpop.permute.xlu0 %124 }
  0x83   :  { %v196_v5 = vsel %vm194_vm6, %v1611_v7, %v125_v35 }
  0x84   :  { %v201_v54 = vsel %vm199_vm7, %v196_v5, %v137_v29 }
  0x86   :  { %v149_v62 = vpop.permute.xlu1 %148  ;;  %v147_v41 = vpop.permute.xlu0 %146 }
  0x87   :  { %v206_v9 = vsel %vm204_vm8, %v201_v54, %v149_v62  ;;  %v205_v11 = vsel %vm204_vm8, %v200_v57, %v147_v41 }
  0x8a   :  { %v161_v39 = vpop.permute.xlu1 %160  ;;  %v159_v45 = vpop.permute.xlu0 %158 }
  0x8b   :  { %v211_v13 = vsel %vm209_vm9, %v206_v9, %v161_v39  ;;  %v210_v14 = vsel %vm209_vm9, %v205_v11, %v159_v45 }
  0x8e   :  { %v173_v16 = vpop.permute.xlu1 %172  ;;  %v171_v18 = vpop.permute.xlu0 %170 }
  0x8f   :  { %v216_v7 = vsel %vm214_vm10, %v211_v13, %v173_v16  ;;  %v215_v48 = vsel %vm214_vm10, %v210_v14, %v171_v18 }
  0x92   :  { %v185_v49 = vpop.permute.xlu1 %184  ;;  %v183_v15 = vpop.permute.xlu0 %182 }
  0x93   :  { %v221_v10 = vsel %vm219_vm11, %v216_v7, %v185_v49  ;;  %v220_v25 = vsel %vm219_vm11, %v215_v48, %v183_v15 }
  0x94   :  { %v243_v36 = vsel %vm238_vm12, %v221_v10, 0  ;;  %v240_v37 = vsel %vm238_vm12, %v220_v25, 0 }
  0x95   :  { %v1978_v50 = vand.u32 4294901760, %v243_v36  ;;  %v1980_v0 = vand.u32 4294901760, %v240_v37 }
  0x96   :  { %v129_v2 = vpop.permute.xlu1 %128  ;;  %v127_v22 = vpop.permute.xlu0 %126 }
  0x97   :  { %v1983_v31 = vsub.f32 %v243_v36, %v1978_v50  ;;  %v1986_v23 = vsub.f32 %v240_v37, %v1980_v0  ;;  %v197_v16 = vsel %vm194_vm6, %v1668_v47, %v127_v22 }
  0x99   :  { %v332_v44 = vand.u32 4294901760, %v1986_v23  ;;  %v342_v52 = vand.u32 4294901760, %v1983_v31 }
  0x9a   :  { %v141_v28 = vpop.permute.xlu1 %140  ;;  %v139_v56 = vpop.permute.xlu0 %138 }
  0x9b   :  { %1285 = vmatprep.mubr.f32.mxu0 %v332_v44  ;;  %v333_v29 = vsub.f32 %v1986_v23, %v332_v44  ;;  %v343_v35 = vsub.f32 %v1983_v31, %v342_v52  ;;  %v202_v54 = vsel %vm199_vm7, %v197_v16, %v139_v56 }
  0x9c   :  { %1286 = vmatmul.mubr.f32.vlgmr.msra.gmra.mrb[0].mxu0 %v342_v52 }
  0x9d   :  { %1474 = vmatpush3.bf16.msra.mxu0 %v1901_v3  ;;  %v334_v62 = vand.u32 4294901760, %v333_v29  ;;  %v344_v41 = vand.u32 4294901760, %v343_v35  ;;  %v198_v3 = vsel %vm194_vm6, %v1643_v33, %v129_v2 }
  0x9e   :  { %v153_v39 = vpop.permute.xlu1 %152  ;;  %v151_v45 = vpop.permute.xlu0 %150  ;;  %1476 = vmatprep.subr.bf16.mxu0 %v1798_v51 }
  0x9f   :  { %1183 = vmatprep.mubr.f32.mxu1 %v334_v62 }
  0xa0   :  { %1184 = vmatmul.mubr.f32.vlgmr.msra.gmra.mrb[0].mxu1 %v344_v41 }
  0xa1   :  { %1390 = vmatpush3.bf16.msra.mxu1 %v1903_v30  ;;  %1478 = vmatpush3.bf16.msra.mxu0 %v1798_v51  ;;  %v203_v51 = vsel %vm199_vm7, %v198_v3, %v141_v28 }
  0xa2   :  { %v165_v58 = vpop.permute.xlu1 %164  ;;  %v163_v5 = vpop.permute.xlu0 %162  ;;  %1392 = vmatprep.subr.bf16.mxu1 %v1841_v12  ;;  %1480 = vmatprep.subr.bf16.mxu0 %v1814_v61 }
  0xa5   :  { %1394 = vmatpush3.bf16.msra.mxu1 %v1841_v12  ;;  %1482 = vmatpush3.bf16.msra.mxu0 %v1814_v61  ;;  %v208_v12 = vsel %vm204_vm8, %v203_v51, %v153_v39  ;;  %v207_v61 = vsel %vm204_vm8, %v202_v54, %v151_v45 }
  0xa6   :  { %v177_v18 = vpop.permute.xlu1 %176  ;;  %v175_v30 = vpop.permute.xlu0 %174  ;;  %1396 = vmatprep.subr.bf16.mxu1 %v1857_v38  ;;  %1484 = vmatprep.subr.bf16.mxu0 %v1863_v24  ;;  %v213_v57 = vsel %vm209_vm9, %v208_v12, %v165_v58  ;;  %v212_v33 = vsel %vm209_vm9, %v207_v61, %v163_v5 }
  0xa7   :  { %v218_v47 = vsel %vm214_vm10, %v213_v57, %v177_v18  ;;  %v217_v9 = vsel %vm214_vm10, %v212_v33, %v175_v30 }
  0xa9   :  { %1398 = vmatpush3.bf16.msra.mxu1 %v1857_v38  ;;  %1486 = vmatpush3.bf16.msra.mxu0 %v1863_v24 }
  0xaa   :  { %v189_v11 = vpop.permute.xlu1 %188  ;;  %v187_v13 = vpop.permute.xlu0 %186  ;;  %1400 = vmatprep.subr.bf16.mxu1 %v1890_v34  ;;  %1488 = vmatprep.subr.bf16.mxu0 %v1883_v26 }
  0xab   :  { %v223_v14 = vsel %vm219_vm11, %v218_v47, %v189_v11  ;;  %v222_v7 = vsel %vm219_vm11, %v217_v9, %v187_v13 }
  0xac   :  { %v249_v48 = vsel %vm238_vm12, %v223_v14, 0  ;;  %v246_v38 = vsel %vm238_vm12, %v222_v7, 0 }
  0xad   :  { %v2022_v49 = vand.u32 4294901760, %v249_v48  ;;  %v2024_v24 = vand.u32 4294901760, %v246_v38  ;;  %1402 = vmatpush3.bf16.msra.mxu1 %v1890_v34  ;;  %1490 = vmatpush3.bf16.msra.mxu0 %v1883_v26 }
  0xae   :  { %1404 = vmatprep.subr.bf16.mxu1 %v1911_v32  ;;  %1492 = vmatprep.subr.bf16.mxu0 %v1907_v4 }
  0xaf   :  { %v361_v15 = vsub.f32 %v249_v48, %v2022_v49  ;;  %v351_v10 = vsub.f32 %v246_v38, %v2024_v24 }
  0xb1   :  { %1406 = vmatpush3.bf16.msra.mxu1 %v1911_v32  ;;  %1494 = vmatpush3.bf16.msra.mxu0 %v1907_v4  ;;  %v352_v25 = vand.u32 4294901760, %v351_v10  ;;  %v362_v36 = vand.u32 4294901760, %v361_v15 }
  0xb2   :  { %1408 = vmatprep.subr.bf16.mxu1 %v1924_v63  ;;  %1496 = vmatprep.subr.bf16.mxu0 %v1928_v40 }
  0xb3   :  { %1288 = vmatprep.mubr.f32.mxu0 %v352_v25  ;;  %v353_v26 = vsub.f32 %v351_v10, %v352_v25  ;;  %v363_v34 = vsub.f32 %v361_v15, %v362_v36 }
  0xb4   :  { %1289 = vmatmul.mubr.f32.gmra.mrb[2].mxu0 %v362_v36 }
  0xb5   :  { %1410 = vmatpush3.bf16.msra.mxu1 %v1924_v63  ;;  %1498 = vmatpush3.bf16.msra.mxu0 %v1928_v40  ;;  %v354_v37 = vand.u32 4294901760, %v353_v26  ;;  %v364_v2 = vand.u32 4294901760, %v363_v34 }
  0xb6   :  { %1319 = vmatprep.mubr.f32.mxu0 %v1980_v0  ;;  %1412 = vmatprep.subr.bf16.mxu1 %v1934_v17 }
  0xb7   :  { %1186 = vmatprep.mubr.f32.mxu1 %v354_v37  ;;  %1500 = vmatprep.subr.bf16.mxu0 %v1693_v1 }
  0xb8   :  { %1187 = vmatmul.mubr.f32.gmra.mrb[2].mxu1 %v364_v2  ;;  %1320 = vmatmul.mubr.f32.vlgmr.msra.gmra.mrb[0].mxu0 %v1978_v50 }
  0xb9   :  { %1414 = vmatpush3.bf16.msra.mxu1 %v1934_v17  ;;  %1502 = vmatpush3.bf16.msra.mxu0 %v1693_v1 }
  0xba   :  { %1217 = vmatprep.mubr.f32.mxu1 %v1980_v0  ;;  %1322 = vmatprep.mubr.f32.mxu0 %v2024_v24 }
  0xbb   :  { %1416 = vmatprep.subr.bf16.mxu1 %v1940_v20  ;;  %1504 = vmatprep.subr.bf16.mxu0 %v1701_v8 }
  0xbc   :  { %1218 = vmatmul.mubr.f32.vlgmr.msra.gmra.mrb[0].mxu1 %v1978_v50  ;;  %1323 = vmatmul.mubr.f32.gmra.mrb[2].mxu0 %v2022_v49 }
  0xbd   :  { %1418 = vmatpush3.bf16.msra.mxu1 %v1940_v20  ;;  %1506 = vmatpush3.bf16.msra.mxu0 %v1701_v8 }
  0xbe   :  { %1220 = vmatprep.mubr.f32.mxu1 %v2024_v24  ;;  %1353 = vmatprep.mubr.f32.mxu0 %v1980_v0 }
  0xbf   :  { %1420 = vmatprep.subr.bf16.mxu1 %v1944_v53  ;;  %1508 = vmatprep.subr.bf16.mxu0 %v1734_v21 }
  0xc0   :  { %1221 = vmatmul.mubr.f32.gmra.mrb[2].mxu1 %v2022_v49 }
  0xc1   :  { %1422 = vmatpush3.bf16.msra.mxu1 %v1944_v53  ;;  %1510 = vmatpush3.bf16.msra.mxu0 %v1734_v21 }
  0xc2   :  { %1251 = vmatprep.mubr.f32.mxu1 %v1986_v23  ;;  %1424 = vmatprep.subr.bf16.mxu1 %v1948_v59 }
  0xc3   :  { %1512 = vmatprep.subr.bf16.mxu0 %v1781_v42 }
  0xc5   :  { %1426 = vmatpush3.bf16.msra.mxu1 %v1948_v59  ;;  %1514 = vmatpush3.bf16.msra.mxu0 %v1781_v42 }
  0xc6   :  { %1428 = vmatprep.subr.bf16.mxu1 %v1952_v60  ;;  %1516 = vmatprep.subr.bf16.mxu0 %v1805_v55 }
  0xc9   :  { %1430 = vmatpush3.bf16.msra.mxu1 %v1952_v60  ;;  %1518 = vmatpush3.bf16.msra.mxu0 %v1805_v55 }
  0xca   :  { %1432 = vmatprep.subr.bf16.mxu1 %v1956_v43  ;;  %1520 = vmatprep.subr.bf16.mxu0 %v1855_v19 }
  0xcd   :  { %1434 = vmatpush3.bf16.msra.mxu1 %v1956_v43  ;;  %1522 = vmatpush3.bf16.msra.mxu0 %v1855_v19 }
  0xce   :  { %1436 = vmatprep.subr.bf16.mxu1 %v1958_v46  ;;  %1524 = vmatprep.subr.bf16.mxu0 %v1881_v6 }
  0xd1   :  { %1438 = vmatpush3.bf16.msra.mxu1 %v1958_v46  ;;  %1526 = vmatpush3.bf16.msra.mxu0 %v1881_v6 }
  0xd2   :  { %1440 = vmatprep.subr.bf16.mxu1 %v1960_v27 }
  0xd4   :  { %1354 = vmatmul.mubr.f32.vlgmr.msra.gmra.mrb[0].mxu0 %v1978_v50 }
  0xd5   :  { %1442 = vmatpush3.bf16.msra.mxu1 %v1960_v27  ;;  %1356 = vmatprep.mubr.f32.mxu0 %v2024_v24 }
  0xd8   :  { %1252 = vmatmul.mubr.f32.vlgmr.msra.gmra.mrb[0].mxu1 %v1983_v31  ;;  %1357 = vmatmul.mubr.f32.gmra.mrb[2].mxu0 %v2022_v49 }
  0xd9   :  { %1254 = vmatprep.mubr.f32.mxu1 %v351_v10 }
  0xdc   :  { %1255 = vmatmul.mubr.f32.gmra.mrb[2].mxu1 %v361_v15 }
 0x1a7   :  { %v1355_v1 = vpop.f32.mrb[0].mxu0 }
 0x1a8   :  { %v973_v8 = vpop.f32.mrb[1].mxu0 }
 0x1ab   :  { %v1253_v21 = vpop.f32.mrb[0].mxu1  ;;  %v1358_v42 = vpop.f32.mrb[2].mxu0 }
 0x1ac   :  { %v1527_v55 = vadd.f32 %v1355_v1, %v1253_v21  ;;  %v625_v19 = vpop.f32.mrb[1].mxu1  ;;  %v985_v6 = vpop.f32.mrb[3].mxu0 }
 0x1ad   :  { %v1528_v4 = vadd.f32 %v973_v8, %v625_v19 }
 0x1ae   :  { %v996_v32 = vsel %vm194_vm6, %v1527_v55, inf  ;;  %v1013_v63 = vsel %vm194_vm6, %v1527_v55, -inf }
 0x1af   :  { %v995_v40 = vsel %vm194_vm6, %v1528_v4, inf  ;;  %v1012_v17 = vsel %vm194_vm6, %v1528_v4, -inf  ;;  %v1256_v20 = vpop.f32.mrb[2].mxu1 }
 0x1b0   :  { %v1529_v53 = vadd.f32 %v1358_v42, %v1256_v20  ;;  %v639_v59 = vpop.f32.mrb[3].mxu1  ;;  %v1016_v60 = vmax.f32 %v1012_v17, %v1013_v63  ;;  %v999_v43 = vmin.f32 %v995_v40, %v996_v32 }
 0x1b1   :  { %v1530_v46 = vadd.f32 %v985_v6, %v639_v59 }
 0x1b2   :  { %v998_v27 = vsel %vm194_vm6, %v1529_v53, inf  ;;  %v1015_v50 = vsel %vm194_vm6, %v1529_v53, -inf }
 0x1b3   :  { %v997_v0 = vsel %vm194_vm6, %v1530_v46, inf  ;;  %v1014_v22 = vsel %vm194_vm6, %v1530_v46, -inf }
 0x1b4   :  { %v1017_v31 = vmax.f32 %v1014_v22, %v1015_v50  ;;  %v1000_v23 = vmin.f32 %v997_v0, %v998_v27 }
 0x1b6   :  { %v1018_v44 = vmax.f32 %v1016_v60, %v1017_v31  ;;  %v1001_v52 = vmin.f32 %v999_v43, %v1000_v23 }
 0x1b8   :  { %1019 = vmax.xlane.f32.xlu1 %v1018_v44  ;;  %1002 = vmin.xlane.f32.xlu0 %v1001_v52 }
 0x245   :  { %v1020_v28 = vpop.xlane.xlu1 %1019  ;;  %v1003_v56 = vpop.xlane.xlu0 %1002 }
 0x246   :  { %v1021_v29 = vrot.slane %v1020_v28, 4  ;;  %v1004_v35 = vrot.slane %v1003_v56, 4 }
 0x248   :  { %v1022_v62 = vmax.f32 %v1020_v28, %v1021_v29  ;;  %v1005_v41 = vmin.f32 %v1003_v56, %v1004_v35 }
 0x24a   :  { %v1023_v39 = vrot.slane %v1022_v62, 2  ;;  %v1006_v45 = vrot.slane %v1005_v41, 2 }
 0x24c   :  { %v1024_v58 = vmax.f32 %v1022_v62, %v1023_v39  ;;  %v1007_v5 = vmin.f32 %v1005_v41, %v1006_v45 }
 0x24e   :  { %v1008_v3 = vrot.slane %v1007_v5, 1  ;;  %v1025_v16 = vrot.slane %v1024_v58, 1 }
 0x250   :  { %v1009_v18 = vmin.f32 %v1007_v5, %v1008_v3  ;;  %v1026_v30 = vmax.f32 %v1024_v58, %v1025_v16 }
 0x252   :  { %1547 = vpush %v1009_v18 }
 0x253   :  { %1549 = vpush %v1026_v30 }
 0x283   :  { %s1548_s18 = spop %1547 }
 0x284   :  { %v1011_v51 = vstv %s1548_s18  ;;  %s1550_s23 = spop %1549 }
 0x285   :  { %v1028_v54 = vstv %s1550_s23 }
 0x286   :  { %v1030_v12 = vsel %vm1029_vm13, %v1011_v51, %v1028_v54 }
 0x287   :  { %1032 = vst.msk [vmem:[#allocation2] sm:$0x1] %vm1031_vm14, %v1030_v12 }
 0x288   :  { %1569 = shalt.err (!%p1566_p4)
}
 0x289   :  { %s1570_s28 = scalar_lea.hbm %s2104_s2, 16 }
 0x28a   :  { %p1571_p5 = scmp.ne.s32.totalorder %s2104_s2, %s1570_s28  ;;  %p1574_p6 = scmp.lt.u32.totalorder %s1570_s28, %s2104_s2 }
 0x28c   :  { %p1576_p7 = pnand %p1574_p6, %p1571_p5 }
 0x28e   :  { %1579 = shalt.err (!%p1576_p7)
}
 0x28f   :  { %1042 = dma.vmem_to_hbm [thread:$0]  %s1040_s17, 16, %s2104_s2, [#allocation3]  }
 0x290   :  { %1580 = dma.done.wait [#allocation3], 16  }
 0x291   :  { %1581 = vsyncadd [#allocation3], 4294967280 }
 0x292   :  { %1046 = vsyncpa [#allocation3], 1 }

</bundles_post_ra>
